<compile_context>
chip_gen: v7x
topology: tpu7x:2x2x1
jax: 0.10.0
libtpu: 0.0.40
codegen_flags: <defaults>
</compile_context>

<pallas_src>
import jax
import jax.numpy as jnp
from jax.experimental import pallas as pl
from jax.experimental.pallas import tpu as pltpu


def _aten_la_kernel(h_ref, wk_ref, bk_ref, wq_ref, bq_ref, out_ref):
    # h_ref:  (BB, T, E)   BB batch elements per grid step
    # wk_ref: (E, R), bk_ref: (1, R)
    # wq_ref: (R, N), bq_ref: (1, N)
    # out_ref:(BB, E, N)
    BB, T, E = h_ref.shape

    h = h_ref[...]                                   # (BB, T, E)
    h_flat = h.reshape(BB * T, E)                    # fuse batch*time tokens

    # K = tanh(H @ Wk + bk) on the whole token slab (single MXU pass).
    k = jnp.tanh(
        jnp.dot(h_flat, wk_ref[...], preferred_element_type=jnp.float32)
        + bk_ref[...]
    )                                                # (BB*T, R)

    # logits = K @ Wq + bq, also fused over BB*T tokens.
    logits = (
        jnp.dot(k, wq_ref[...], preferred_element_type=jnp.float32)
        + bq_ref[...]
    )                                                # (BB*T, N)

    # Row softmax (max-subtracted). approx reciprocal runs on the otherwise
    # idle EUP slot; relative error ~1e-4, well inside test tolerance.
    logits = logits - jnp.max(logits, axis=-1, keepdims=True)
    e = jnp.exp(logits)
    a = e * pl.reciprocal(jnp.sum(e, axis=-1, keepdims=True), approx=True)

    a = a.reshape(BB, T, -1)                         # (BB, T, N)

    # out[b] = H[b]^T @ A[b]: batched contraction over T, no explicit
    # transpose materialized (MXU handles the transposed-LHS contraction).
    out_ref[...] = jax.lax.dot_general(
        h, a,
        dimension_numbers=(((1,), (1,)), ((0,), (0,))),
        preferred_element_type=jnp.float32,
    )                                                # (BB, E, N)


def extract_aten_la(h, wk, bk, wq, bq):
    """h: (B, T, E) float32; wk: (E, R); bk: (R,); wq: (R, N); bq: (N,)."""
    B, T, E = h.shape
    R = wk.shape[1]
    N = wq.shape[1]

    # Split the batch over 2 grid steps when possible: amortizes the ~0.35us
    # per-step overhead over BB = B//2 elements while still giving v7x's two
    # TensorCores one "parallel" step each. Odd B falls back to one step per
    # batch element.
    steps = 2 if (B % 2 == 0 and B >= 2) else B
    BB = B // steps

    bk2 = bk.reshape(1, R)
    bq2 = bq.reshape(1, N)

    return pl.pallas_call(
        _aten_la_kernel,
        out_shape=jax.ShapeDtypeStruct((B, E, N), jnp.float32),
        grid_spec=pltpu.PrefetchScalarGridSpec(
            num_scalar_prefetch=0,
            grid=(steps,),
            in_specs=[
                pl.BlockSpec((BB, T, E), lambda b: (b, 0, 0)),
                # Constant block indices: weights/biases are DMA'd once and
                # kept resident across grid steps.
                pl.BlockSpec((E, R), lambda b: (0, 0)),
                pl.BlockSpec((1, R), lambda b: (0, 0)),
                pl.BlockSpec((R, N), lambda b: (0, 0)),
                pl.BlockSpec((1, N), lambda b: (0, 0)),
            ],
            out_specs=pl.BlockSpec((BB, E, N), lambda b: (b, 0, 0)),
        ),
        compiler_params=pltpu.CompilerParams(
            dimension_semantics=("parallel",)
        ),
    )(h, wk, bk2, wq, bq2)


def reference(h, wk, bk, wq, bq):
    k = jnp.tanh(jnp.einsum("bte,er->btr", h, wk) + bk)
    a = jax.nn.softmax(jnp.einsum("btr,rn->btn", k, wq) + bq, axis=-1)
    return jnp.einsum("bte,btn->ben", h, a)


if __name__ == "__main__":
    # Small shapes implied by the module:
    #   batch=2, seq(T)=8, encoder_dim=32, relationHeadDim=16, num_nodes=8
    B, T, E, R, N = 2, 8, 32, 16, 8

    key = jax.random.PRNGKey(0)
    k_h, k_wk, k_bk, k_wq, k_bq = jax.random.split(key, 5)

    h = jax.random.normal(k_h, (B, T, E), dtype=jnp.float32)
    # nn.Linear weights stored pre-transposed to (in_features, out_features).
    wk = jax.random.normal(k_wk, (E, R), dtype=jnp.float32) * 0.1
    bk = jax.random.normal(k_bk, (R,), dtype=jnp.float32) * 0.1
    wq = jax.random.normal(k_wq, (R, N), dtype=jnp.float32) * 0.1
    bq = jax.random.normal(k_bq, (N,), dtype=jnp.float32) * 0.1

    out = extract_aten_la(h, wk, bk, wq, bq)
    out = jax.block_until_ready(out)

    ref = reference(h, wk, bk, wq, bq)
    assert out.shape == (B, E, N), out.shape
    # Tolerance loosened slightly vs. exact-f32 because the softmax denominator
    # uses the approximate EUP reciprocal (rel. err ~1e-4).
    assert jnp.allclose(out, ref, atol=2e-3, rtol=2e-3), \
        float(jnp.max(jnp.abs(out - ref)))

    print("KERNEL_OK")
</pallas_src>

<mosaic_0001>
module attributes {stable_mosaic.version = 11 : i64} {
  func.func @_aten_la_kernel(%arg0: i32, %arg1: memref<1x8x32xf32, #tpu.memory_space<vmem>>, %arg2: memref<32x16xf32, #tpu.memory_space<vmem>>, %arg3: memref<1x16xf32, #tpu.memory_space<vmem>>, %arg4: memref<16x8xf32, #tpu.memory_space<vmem>>, %arg5: memref<1x8xf32, #tpu.memory_space<vmem>>, %arg6: memref<1x32x8xf32, #tpu.memory_space<vmem>>) attributes {dimension_semantics = [#tpu.dimension_semantics<parallel>], iteration_bounds = array<i64: 2>, scalar_prefetch = 0 : i64, scratch_operands = 0 : i64, tpu.core_type = #tpu.core_type<tc>, window_params = [{transform_indices = @transform_0, window_bounds = array<i64: 1, 8, 32>}, {pipeline_mode = #tpu.pipeline_mode<synchronous>, transform_indices = @transform_1, window_bounds = array<i64: 32, 16>}, {pipeline_mode = #tpu.pipeline_mode<synchronous>, transform_indices = @transform_2, window_bounds = array<i64: 1, 16>}, {pipeline_mode = #tpu.pipeline_mode<synchronous>, transform_indices = @transform_3, window_bounds = array<i64: 16, 8>}, {pipeline_mode = #tpu.pipeline_mode<synchronous>, transform_indices = @transform_4, window_bounds = array<i64: 1, 8>}, {transform_indices = @transform_5, window_bounds = array<i64: 1, 32, 8>}]} {
    %c0 = arith.constant 0 : index
    %c0_0 = arith.constant 0 : index
    %c0_1 = arith.constant 0 : index
    %0 = vector.load %arg1[%c0, %c0_0, %c0_1] : memref<1x8x32xf32, #tpu.memory_space<vmem>>, vector<1x8x32xf32>
    %1 = vector.shape_cast %0 : vector<1x8x32xf32> to vector<8x32xf32>
    %c0_2 = arith.constant 0 : index
    %c0_3 = arith.constant 0 : index
    %2 = vector.load %arg2[%c0_2, %c0_3] : memref<32x16xf32, #tpu.memory_space<vmem>>, vector<32x16xf32>
    %cst = arith.constant dense<0.000000e+00> : vector<8x16xf32>
    %3 = tpu.matmul %1, %2, %cst {dimension_numbers = #tpu.dot_dimension_numbers<[1], [0], [0], [1], [0, 0, 1, 1], [], []>} : vector<8x32xf32>, vector<32x16xf32>, vector<8x16xf32> -> vector<8x16xf32>
    %c0_4 = arith.constant 0 : index
    %c0_5 = arith.constant 0 : index
    %4 = vector.load %arg3[%c0_4, %c0_5] : memref<1x16xf32, #tpu.memory_space<vmem>>, vector<1x16xf32>
    %5 = vector.broadcast %4 : vector<1x16xf32> to vector<8x16xf32>
    %6 = arith.addf %3, %5 : vector<8x16xf32>
    %7 = math.tanh %6 : vector<8x16xf32>
    %c0_6 = arith.constant 0 : index
    %c0_7 = arith.constant 0 : index
    %8 = vector.load %arg4[%c0_6, %c0_7] : memref<16x8xf32, #tpu.memory_space<vmem>>, vector<16x8xf32>
    %cst_8 = arith.constant dense<0.000000e+00> : vector<8x8xf32>
    %9 = tpu.matmul %7, %8, %cst_8 {dimension_numbers = #tpu.dot_dimension_numbers<[1], [0], [0], [1], [0, 0, 1, 1], [], []>} : vector<8x16xf32>, vector<16x8xf32>, vector<8x8xf32> -> vector<8x8xf32>
    %c0_9 = arith.constant 0 : index
    %c0_10 = arith.constant 0 : index
    %10 = vector.load %arg5[%c0_9, %c0_10] : memref<1x8xf32, #tpu.memory_space<vmem>>, vector<1x8xf32>
    %11 = vector.broadcast %10 : vector<1x8xf32> to vector<8x8xf32>
    %12 = arith.addf %9, %11 : vector<8x8xf32>
    %cst_11 = arith.constant dense<0xFF800000> : vector<8xf32>
    %13 = vector.multi_reduction <maximumf>, %12, %cst_11 [1] : vector<8x8xf32> to vector<8xf32>
    %14 = vector.shape_cast %13 : vector<8xf32> to vector<8x1xf32>
    %15 = vector.broadcast %14 : vector<8x1xf32> to vector<8x8xf32>
    %16 = arith.subf %12, %15 : vector<8x8xf32>
    %17 = math.exp %16 : vector<8x8xf32>
    %cst_12 = arith.constant dense<0.000000e+00> : vector<8xf32>
    %18 = vector.multi_reduction <add>, %17, %cst_12 [1] : vector<8x8xf32> to vector<8xf32>
    %19 = vector.shape_cast %18 : vector<8xf32> to vector<8x1xf32>
    %20 = tpu.reciprocal %19 {approx = true} : vector<8x1xf32> -> vector<8x1xf32>
    %21 = vector.broadcast %20 : vector<8x1xf32> to vector<8x8xf32>
    %22 = arith.mulf %17, %21 : vector<8x8xf32>
    %23 = vector.shape_cast %22 : vector<8x8xf32> to vector<1x8x8xf32>
    %cst_13 = arith.constant dense<0.000000e+00> : vector<1x32x8xf32>
    %24 = tpu.matmul %0, %23, %cst_13 {dimension_numbers = #tpu.dot_dimension_numbers<[1], [1], [2], [2], [0, 0, 0, 2, 1, 2], [0], [0]>} : vector<1x8x32xf32>, vector<1x8x8xf32>, vector<1x32x8xf32> -> vector<1x32x8xf32>
    %c0_14 = arith.constant 0 : index
    %c0_15 = arith.constant 0 : index
    %c0_16 = arith.constant 0 : index
    %25 = vector.load %arg6[%c0_14, %c0_15, %c0_16] : memref<1x32x8xf32, #tpu.memory_space<vmem>>, vector<1x32x8xf32>
    tpu.vector_store %arg6[%c0_14, %c0_15, %c0_16], %24 {strides = array<i32>} : memref<1x32x8xf32, #tpu.memory_space<vmem>>, vector<1x32x8xf32>,
    return
  }
  func.func @transform_0(%arg0: i32) -> (i32, i32, i32) {
    %c0_i32 = arith.constant 0 : i32
    %c0_i32_0 = arith.constant 0 : i32
    %c0_i32_1 = arith.constant 0 : i32
    return %arg0, %c0_i32, %c0_i32_0 : i32, i32, i32
  }
  func.func @transform_1(%arg0: i32) -> (i32, i32) {
    %c0_i32 = arith.constant 0 : i32
    %c0_i32_0 = arith.constant 0 : i32
    %c0_i32_1 = arith.constant 0 : i32
    return %c0_i32, %c0_i32_0 : i32, i32
  }
  func.func @transform_2(%arg0: i32) -> (i32, i32) {
    %c0_i32 = arith.constant 0 : i32
    %c0_i32_0 = arith.constant 0 : i32
    %c0_i32_1 = arith.constant 0 : i32
    return %c0_i32, %c0_i32_0 : i32, i32
  }
  func.func @transform_3(%arg0: i32) -> (i32, i32) {
    %c0_i32 = arith.constant 0 : i32
    %c0_i32_0 = arith.constant 0 : i32
    %c0_i32_1 = arith.constant 0 : i32
    return %c0_i32, %c0_i32_0 : i32, i32
  }
  func.func @transform_4(%arg0: i32) -> (i32, i32) {
    %c0_i32 = arith.constant 0 : i32
    %c0_i32_0 = arith.constant 0 : i32
    %c0_i32_1 = arith.constant 0 : i32
    return %c0_i32, %c0_i32_0 : i32, i32
  }
  func.func @transform_5(%arg0: i32) -> (i32, i32, i32) {
    %c0_i32 = arith.constant 0 : i32
    %c0_i32_0 = arith.constant 0 : i32
    %c0_i32_1 = arith.constant 0 : i32
    return %arg0, %c0_i32, %c0_i32_0 : i32, i32, i32
  }
}

</mosaic_0001>

<bundles_post_ra>
// kernel: tpu_custom_call.1
= control target key start
LH: loop header
LB: loop body
LE: loop exit
PB: predicated region body
PF: predicated region fallthrough
CT: control target
= control target key end

     0   :  { %s717_s18 = smov 0   ;;  %s772_s0 = inlined_call_operand.vmem [shape: f32[2,8,32], index: 0, kind: input, shape index: {}]   ;;  %s773_s1 = inlined_call_operand.vmem [shape: f32[32,16], index: 1, kind: input, shape index: {}]   ;;  %s774_s2 = inlined_call_operand.vmem [shape: f32[1,16], index: 2, kind: input, shape index: {}]   ;;  %s775_s3 = inlined_call_operand.vmem [shape: f32[16,8], index: 3, kind: input, shape index: {}]   ;;  %s776_s4 = inlined_call_operand.vmem [shape: f32[1,8], index: 4, kind: input, shape index: {}]   ;;  %s777_s5 = inlined_call_operand.vmem [shape: f32[2,32,8], index: 5, kind: output, shape index: {}]  }
   0x1 LB: > { %s592_s19 = sadd.s32 4294967295, %s682_s18   ;;  %p596_p0 = scmp.ge.s32.totalorder %s682_s18, 1  ;;  %s682_s18 = sphi %s717_s18, %s15_s18  }
   0x2   : > { %p186_p1 = scmp.lt.s32.totalorder %s682_s18, 3 }
   0x4   : > { %p187_p2 = pnand %p596_p0, %p186_p1 }
   0x5   : > { %v223_v0 = vld [vmem:[%s773_s1] sm:$0xff] (!%p187_p2)  ;;  %v224_v1 = vld [vmem:[%s773_s1 + $0x8] sm:$0xff] (!%p187_p2)  ;;  %v225_v2 = vld [vmem:[%s773_s1 + $0x10] sm:$0xff] (!%p187_p2)  ;;  %v684_v3 = vmov (!%p187_p2), 0.0|0.0   ;;  %vm685_vm0 = vmmov (!%p187_p2), 0   ;;  %v686_v6 = vmov (!%p187_p2), 0.0  }
   0x6   : > { %190 = sbr.rel (%p187_p2) target bundleno = 990 (0x3de), region = 40  ;;  %650 = vmatprep.subr.bf16.mxu0 (!%p187_p2), %v684_v3  ;;  %v651_v4 = vpack.c.bf16 (!%p187_p2), %v224_v1, %v223_v0  ;;  %v226_v5 = vld [vmem:[%s773_s1 + $0x18] sm:$0xff] (!%p187_p2)  ;;  %632 = vmatprep.mubr.msk.f32.mxu0 (!%p187_p2), %vm685_vm0, %v686_v6  ;;  %p213_p3 = scmp.lt.s32.totalorder (!%p187_p2), %s592_s19, 1  ;;  %vm234_vm1 = vcmask (!%p187_p2), 261120   ;;  %v309_v9 = vld [vmem:[%s775_s3] sm:$0xff] (!%p187_p2)  ;;  %v310_v10 = vld [vmem:[%s775_s3 + $0x8] sm:$0xff] (!%p187_p2) }
   0x7   : > { %656 = vmatprep.subr.bf16.mxu1 (!%p187_p2), %v684_v3  ;;  %639 = vmatprep.mubr.msk.f32.mxu1 (!%p187_p2), %vm685_vm0, %v686_v6  ;;  %v654_v7 = vpack.c.bf16 (!%p187_p2), %v226_v5, %v225_v2  ;;  %v657_v11 = vpack.c.bf16 (!%p187_p2), %v310_v10, %v309_v9  ;;  %v600_v12 = vld [vmem:[%s774_s2] ss:$0 sm:$0xff] (!%p187_p2)  ;;  %vm318_vm2 = vcmask (!%p187_p2), 130048   ;;  %vm392_vm3 = vcmask (!%p187_p2), 64512  }
   0x8   : > { %652 = vmatpush3.bf16.msra.mxu0 (!%p187_p2), %v651_v4  ;;  %v602_v17 = vld [vmem:[%s776_s4] ss:$0 sm:$0xff] (!%p187_p2) }
   0x9   : > { %653 = vmatprep.subr.bf16.mxu0 (!%p187_p2), %v684_v3  ;;  %658 = vmatpush3.bf16.msra.mxu1 (!%p187_p2), %v657_v11 }
   0xc   : > { %655 = vmatpush3.bf16.msra.mxu0 (!%p187_p2), %v654_v7 }
   0xd   : > { %s779_s19 = smov (!%p213_p3, %s592_s19), 1 }
   0xe   : > { %s597_s28 = sshll.u32 %s779_s19, 3  ;;  %s610_s15 = sshll.u32 %s779_s19, 5 }
   0xf   : > { %s216_s6 = scalar_lea.vmem %s772_s0, %s597_s28  ;;  %s221_s20 = scalar_lea.vmem %s777_s5, %s610_s15 }
  0x10   : > { %v222_v8 = vld [vmem:[%s216_s6] sm:$0xff] }
  0x11   : > { %404 = vxpose.xlu1.b32.start.end [1/1] (short) (narrow) %v222_v8, 32  ;;  %633 = vmatmul.mubr.msk.f32.vlgmr.msra.gmra.mrb[0].mxu0 %vm234_vm1, %v222_v8 }
  0x91   : > { %v420_v27 = vpop.trf.xlu1 }
  0x95   : > { %v421_v29 = vpop.trf.xlu1 }
  0x99   : > { %v422_v31 = vpop.trf.xlu1 }
  0x9d   : > { %v423_v33 = vpop.trf.xlu1 }
  0xe4   : > { %v304_v13 = vpop.f32.mrb[0].mxu0 }
  0xe5   : > { %v305_v14 = vadd.f32 %v600_v12, %v304_v13  ;;  %v634_v15 = vpop.f32.mrb[1].mxu0 }
  0xe7   : > { %670 = vtanh.f32 %v305_v14 }
  0xf1   : > { %v671_v16 = vpop.eup %670 }
  0xf2   : > { %640 = vmatmul.mubr.msk.f32.vlgmr.msra.gmra.mrb[0].mxu1 %vm318_vm2, %v671_v16 }
  0xf3   : > { %644 = vmatprep.mubr.msk.f32.mxu1 %vm392_vm3, %v420_v27 }
 0x1c5   : > { %v388_v18 = vpop.f32.mrb[0].mxu1 }
 0x1c6   : > { %v389_v19 = vadd.f32 %v602_v17, %v388_v18  ;;  %v641_v20 = vpop.f32.mrb[1].mxu1 }
 0x1c8   : > { %v393_v21 = vsel %vm392_vm3, %v389_v19, -inf }
 0x1c9   : > { %394 = vmax.xlane.f32.xlu0 %v393_v21 }
 0x256   : > { %v395_v22 = vpop.xlane.xlu0 %394 }
 0x257   : > { %v396_v23 = vsub.f32 %v389_v19, %v395_v22 }
 0x259   : > { %v397_v24 = vmul.f32 1.442695, %v396_v23 }
 0x25b   : > { %672 = vpow2.f32 %v397_v24 }
 0x265   : > { %v673_v25 = vpop.eup %672 }
 0x266   : > { %v399_v26 = vsel %vm392_vm3, %v673_v25, 0.0 }
 0x267   : > { %400 = vadd.xlane.f32.xlu0 %v399_v26 }
 0x2f4   : > { %v401_v28 = vpop.xlane.xlu0 %400 }
 0x2f5   : > { %674 = vrcp.f32 %v401_v28 }
 0x2ff   : > { %v675_v30 = vpop.eup %674 }
 0x300   : > { %v403_v32 = vmul.f32 %v675_v30, %v673_v25 }
 0x302   : > { %642 = vmatprep.subr.mxu1 %v403_v32 }
 0x303   : > { %643 = vmatpush3.msra.mxu1 %v403_v32 }
 0x304   : > { %645 = vmatmul.mubr.msk.f32.vlgmr.msra.gmra.mrb[2].mxu1 %vm392_vm3, %v421_v29 }
 0x305   : > { %647 = vmatprep.mubr.msk.f32.mxu1 %vm392_vm3, %v422_v31 }
 0x308   : > { %648 = vmatmul.mubr.msk.f32.gmra.mrb[4].mxu1 %vm392_vm3, %v423_v33 }
 0x3d7   : > { %v646_v34 = vpop.f32.mrb[2].mxu1 }
 0x3d8   : > { %534 = vst.msk [vmem:[%s221_s20 + $0x8] sm:$0xff] %vm392_vm3, %v646_v34  ;;  %v514_v35 = vpop.f32.mrb[3].mxu1 }
 0x3d9   : > { %533 = vst.msk [vmem:[%s221_s20] sm:$0xff] %vm392_vm3, %v514_v35 }
 0x3db   : > { %v649_v36 = vpop.f32.mrb[4].mxu1 }
 0x3dc   : > { %536 = vst.msk [vmem:[%s221_s20 + $0x18] sm:$0xff] %vm392_vm3, %v649_v36  ;;  %v524_v37 = vpop.f32.mrb[5].mxu1 }
 0x3dd   : > { %535 = vst.msk [vmem:[%s221_s20 + $0x10] sm:$0xff] %vm392_vm3, %v524_v37 }
 0x3de PF: > { %s15_s18 = sadd.s32 1, %s682_s18  }
 0x3df   : > { %p12_p4 = scmp.ge.s32.totalorder %s15_s18, 4  }
 0x3e1   :  { %14 = sbr.rel (!%p12_p4) target bundleno = 1 (0x1), region = 70 }

</bundles_post_ra>
